<compile_context>
chip_gen: v5e
topology: v5e:2x2
jax: 0.10.0
libtpu: 0.0.40
codegen_flags: <defaults>
</compile_context>

<pallas_src>
import functools

import jax
import jax.numpy as jnp
from jax.experimental import pallas as pl
from jax.experimental.pallas import tpu as pltpu

LANES = 128


def _sublane_gran(dtype):
    # Second-to-last block dim granularity: 8 for 4-byte, 16 for 2-byte,
    # 32 for 1-byte elements.
    return max(8, 32 // jnp.dtype(dtype).itemsize)


def _focal_terms(l, t, gamma):
    # sigmoid(-x) == 1 - sigmoid(x): fold the target select into the argument.
    z = jnp.where(t >= 0.5, l, -l)
    p = jax.nn.sigmoid(z)
    logp = -jnp.log(jnp.clip(p, 0.0001, 1.0 - 0.0001))
    omp = 1.0 - p
    if isinstance(gamma, int) and gamma == 2:
        w = omp * omp            # plain VPU multiplies; avoid pow -> exp/log
    else:
        w = omp ** gamma         # gamma is a static Python constant
    return logp * w


def _focal_kernel(l_ref, t_ref, out_ref, acc_ref, *, tile_rows, gamma):
    k = pl.program_id(1)          # sequential reduction axis
    nk = pl.num_programs(1)

    @pl.when(k == 0)
    def _():
        acc_ref[...] = jnp.zeros_like(acc_ref)

    l = l_ref[...].astype(jnp.float32)
    t = t_ref[...].astype(jnp.float32)
    loss = _focal_terms(l, t, gamma)

    # (tile_rows, 128) -> (8, 128) vreg-wise partial sums (VPU adds only).
    acc_ref[...] += loss.reshape(tile_rows // 8, 8, LANES).sum(axis=0)

    @pl.when(k == nk - 1)
    def _():
        out_ref[0, 0] = jnp.sum(acc_ref[...])   # single cross-lane reduce


def focal_loss(logits, targets, gamma=2, tile_rows=4096, num_cores=1):
    """Pallas implementation of FocalLoss(gamma).forward(logits, targets).

    num_cores=1 is right for v5e/v6e (single TensorCore).  On v7x pass
    num_cores=2 so the leading "parallel" grid axis shards across both cores.
    """
    l = logits.reshape(-1)
    t = targets.reshape(-1)
    n = l.shape[0]

    gran = max(_sublane_gran(l.dtype), _sublane_gran(t.dtype))

    rows = n // LANES
    per_core_rows = rows // max(num_cores, 1)
    tr = min((int(tile_rows) // gran) * gran, (per_core_rows // gran) * gran)
    steps = (rows // (tr * num_cores)) if tr > 0 else 0

    main = 0
    main_sum = jnp.float32(0.0)
    if steps > 0:
        main_rows = steps * tr * num_cores
        main = main_rows * LANES

        if rows * LANES == n:
            # Pure bitcast reshape: no HBM copy.  The grid only visits the
            # first main_rows rows; trailing rows are never touched.
            l2 = l.reshape(rows, LANES)
            t2 = t.reshape(rows, LANES)
        else:
            # Rare: flat size not a multiple of 128.  XLA materializes this
            # prefix slice; the sub-row remainder goes to the epilogue.
            l2 = l[: rows * LANES].reshape(rows, LANES)
            t2 = t[: rows * LANES].reshape(rows, LANES)

        in_block = pl.BlockSpec((tr, LANES), lambda c, k: (c * steps + k, 0))

        # Explicit scoped-VMEM budget: 2 inputs x 2 buffers x tile, plus slack.
        tile_bytes = tr * LANES * (l.dtype.itemsize + t.dtype.itemsize)
        vmem_limit = int(min(64 << 20, max(16 << 20, 2 * tile_bytes + (2 << 20))))

        partials = pl.pallas_call(
            functools.partial(_focal_kernel, tile_rows=tr, gamma=gamma),
            out_shape=jax.ShapeDtypeStruct((num_cores, 1), jnp.float32),
            grid_spec=pltpu.PrefetchScalarGridSpec(
                num_scalar_prefetch=0,
                grid=(num_cores, steps),
                in_specs=[in_block, in_block],
                out_specs=pl.BlockSpec((1, 1), lambda c, k: (c, 0),
                                       memory_space=pltpu.SMEM),
                scratch_shapes=[pltpu.VMEM((8, LANES), jnp.float32)],
            ),
            compiler_params=pltpu.CompilerParams(
                dimension_semantics=("parallel", "arbitrary"),
                vmem_limit_bytes=vmem_limit),
        )(l2, t2)
        main_sum = jnp.sum(partials)

    total = main_sum
    if main < n:
        # Tail (< num_cores*tile_rows*128 elements): tiny fused JAX epilogue.
        lt = l[main:].astype(jnp.float32)
        tt = t[main:].astype(jnp.float32)
        total = total + jnp.sum(_focal_terms(lt, tt, gamma))

    return 28.0 * total / jnp.float32(n)


def _focal_loss_ref(logits, targets, gamma=2):
    l = logits.reshape(-1).astype(jnp.float32)
    t = targets.reshape(-1).astype(jnp.float32)
    p = jax.nn.sigmoid(l)
    p = jnp.where(t >= 0.5, p, 1.0 - p)
    logp = -jnp.log(jnp.clip(p, 0.0001, 1.0 - 0.0001))
    return 28.0 * jnp.mean(logp * (1.0 - p) ** gamma)


if __name__ == "__main__":
    key = jax.random.PRNGKey(0)
    k1, k2 = jax.random.split(key)
    # NCHW, consistent with a segmentation/conv head feeding this loss.
    logits = jax.random.normal(k1, (2, 4, 16, 16), dtype=jnp.float32)
    targets = (jax.random.uniform(k2, (2, 4, 16, 16)) > 0.5).astype(jnp.float32)

    out = jax.block_until_ready(focal_loss(logits, targets, gamma=2))
    ref = _focal_loss_ref(logits, targets, gamma=2)
    assert jnp.allclose(out, ref, rtol=1e-5, atol=1e-5), (out, ref)
    print("KERNEL_OK")
</pallas_src>

<mosaic_0001>
module attributes {stable_mosaic.version = 11 : i64} {
  func.func @_focal_kernel(%arg0: i32, %arg1: i32, %arg2: memref<16x128xf32, #tpu.memory_space<vmem>>, %arg3: memref<16x128xf32, #tpu.memory_space<vmem>>, %arg4: memref<1x1xf32, #tpu.memory_space<smem>>, %arg5: memref<8x128xf32, #tpu.memory_space<vmem>>) attributes {dimension_semantics = [#tpu.dimension_semantics<parallel>, #tpu.dimension_semantics<arbitrary>], iteration_bounds = array<i64: 1, 1>, scalar_prefetch = 0 : i64, scratch_operands = 1 : i64, tpu.core_type = #tpu.core_type<tc>, window_params = [{transform_indices = @transform_0, window_bounds = array<i64: 16, 128>}, {transform_indices = @transform_1, window_bounds = array<i64: 16, 128>}, {transform_indices = @transform_2, window_bounds = array<i64: 1, 1>}]} {
    %c0_i32 = arith.constant 0 : i32
    %0 = arith.cmpi eq, %arg1, %c0_i32 : i32
    %1 = arith.extui %0 : i1 to i32
    %c0_i32_0 = arith.constant 0 : i32
    %2 = arith.cmpi ne, %1, %c0_i32_0 : i32
    scf.if %2 {
      %cst_17 = arith.constant 0.000000e+00 : f32
      %34 = vector.broadcast %cst_17 : f32 to vector<8x128xf32>
      %c0_18 = arith.constant 0 : index
      %c0_19 = arith.constant 0 : index
      %35 = vector.load %arg5[%c0_18, %c0_19] : memref<8x128xf32, #tpu.memory_space<vmem>>, vector<8x128xf32>
      tpu.vector_store %arg5[%c0_18, %c0_19], %34 {strides = array<i32>} : memref<8x128xf32, #tpu.memory_space<vmem>>, vector<8x128xf32>,
    } else {
    }
    %c0 = arith.constant 0 : index
    %c0_1 = arith.constant 0 : index
    %3 = vector.load %arg2[%c0, %c0_1] : memref<16x128xf32, #tpu.memory_space<vmem>>, vector<16x128xf32>
    %c0_2 = arith.constant 0 : index
    %c0_3 = arith.constant 0 : index
    %4 = vector.load %arg3[%c0_2, %c0_3] : memref<16x128xf32, #tpu.memory_space<vmem>>, vector<16x128xf32>
    %cst = arith.constant 5.000000e-01 : f32
    %5 = vector.broadcast %cst : f32 to vector<16x128xf32>
    %6 = arith.cmpf oge, %4, %5 : vector<16x128xf32>
    %cst_4 = arith.constant 0.000000e+00 : f32
    %7 = vector.broadcast %cst_4 : f32 to vector<16x128xf32>
    %8 = arith.subf %7, %3 : vector<16x128xf32>
    %9 = arith.select %6, %3, %8 : vector<16x128xi1>, vector<16x128xf32>
    %10 = arith.negf %9 : vector<16x128xf32>
    %11 = math.exp %10 : vector<16x128xf32>
    %cst_5 = arith.constant 1.000000e+00 : f32
    %12 = vector.broadcast %cst_5 : f32 to vector<16x128xf32>
    %13 = arith.addf %12, %11 : vector<16x128xf32>
    %14 = arith.divf %12, %13 : vector<16x128xf32>
    %cst_6 = arith.constant 9.99999974E-5 : f32
    %cst_7 = arith.constant 0.999899983 : f32
    %15 = vector.broadcast %cst_6 : f32 to vector<16x128xf32>
    %16 = arith.maximumf %15, %14 : vector<16x128xf32>
    %17 = vector.broadcast %cst_7 : f32 to vector<16x128xf32>
    %18 = arith.minimumf %17, %16 : vector<16x128xf32>
    %19 = math.log %18 : vector<16x128xf32>
    %cst_8 = arith.constant 0.000000e+00 : f32
    %20 = vector.broadcast %cst_8 : f32 to vector<16x128xf32>
    %21 = arith.subf %20, %19 : vector<16x128xf32>
    %cst_9 = arith.constant 1.000000e+00 : f32
    %22 = vector.broadcast %cst_9 : f32 to vector<16x128xf32>
    %23 = arith.subf %22, %14 : vector<16x128xf32>
    %24 = arith.mulf %23, %23 : vector<16x128xf32>
    %25 = arith.mulf %21, %24 : vector<16x128xf32>
    %c0_10 = arith.constant 0 : index
    %c0_11 = arith.constant 0 : index
    %26 = vector.load %arg5[%c0_10, %c0_11] : memref<8x128xf32, #tpu.memory_space<vmem>>, vector<8x128xf32>
    %27 = vector.shape_cast %25 : vector<16x128xf32> to vector<2x8x128xf32>
    %cst_12 = arith.constant dense<0.000000e+00> : vector<8x128xf32>
    %28 = vector.multi_reduction <add>, %27, %cst_12 [0] : vector<2x8x128xf32> to vector<8x128xf32>
    %29 = arith.addf %26, %28 : vector<8x128xf32>
    %c0_13 = arith.constant 0 : index
    %c0_14 = arith.constant 0 : index
    %30 = vector.load %arg5[%c0_13, %c0_14] : memref<8x128xf32, #tpu.memory_space<vmem>>, vector<8x128xf32>
    tpu.vector_store %arg5[%c0_13, %c0_14], %29 {strides = array<i32>} : memref<8x128xf32, #tpu.memory_space<vmem>>, vector<8x128xf32>,
    %c0_i32_15 = arith.constant 0 : i32
    %31 = arith.cmpi eq, %arg1, %c0_i32_15 : i32
    %32 = arith.extui %31 : i1 to i32
    %c0_i32_16 = arith.constant 0 : i32
    %33 = arith.cmpi ne, %32, %c0_i32_16 : i32
    scf.if %33 {
      %c0_17 = arith.constant 0 : index
      %c0_18 = arith.constant 0 : index
      %34 = vector.load %arg5[%c0_17, %c0_18] : memref<8x128xf32, #tpu.memory_space<vmem>>, vector<8x128xf32>
      %35 = vector.shape_cast %34 : vector<8x128xf32> to vector<1x8x128xf32>
      %cst_19 = arith.constant dense<0.000000e+00> : vector<1xf32>
      %36 = vector.multi_reduction <add>, %35, %cst_19 [1, 2] : vector<1x8x128xf32> to vector<1xf32>
      %37 = vector.shape_cast %36 : vector<1xf32> to vector<1x1x1xf32>
      %38 = vector.extract %37[0, 0, 0] : f32 from vector<1x1x1xf32>
      %c0_20 = arith.constant 0 : index
      %c0_21 = arith.constant 0 : index
      %39 = memref.load %arg4[%c0_20, %c0_21] : memref<1x1xf32, #tpu.memory_space<smem>>
      memref.store %38, %arg4[%c0_20, %c0_21] : memref<1x1xf32, #tpu.memory_space<smem>>
    } else {
    }
    return
  }
  func.func @transform_0(%arg0: i32, %arg1: i32) -> (i32, i32) {
    %c1_i32 = arith.constant 1 : i32
    %0 = arith.muli %arg0, %c1_i32 : i32
    %1 = arith.addi %0, %arg1 : i32
    %c0_i32 = arith.constant 0 : i32
    %c0_i32_0 = arith.constant 0 : i32
    return %1, %c0_i32 : i32, i32
  }
  func.func @transform_1(%arg0: i32, %arg1: i32) -> (i32, i32) {
    %c1_i32 = arith.constant 1 : i32
    %0 = arith.muli %arg0, %c1_i32 : i32
    %1 = arith.addi %0, %arg1 : i32
    %c0_i32 = arith.constant 0 : i32
    %c0_i32_0 = arith.constant 0 : i32
    return %1, %c0_i32 : i32, i32
  }
  func.func @transform_2(%arg0: i32, %arg1: i32) -> (i32, i32) {
    %c0_i32 = arith.constant 0 : i32
    %c0_i32_0 = arith.constant 0 : i32
    return %arg0, %c0_i32 : i32, i32
  }
}

</mosaic_0001>

<bundles_post_ra>
// kernel: tpu_custom_call.1
= control target key start
LH: loop header
LB: loop body
LE: loop exit
PB: predicated region body
PF: predicated region fallthrough
CT: control target
= control target key end

     0   :  { %7 = vsyncpa [#allocation4], 0  ;;  %s277_s0 = inlined_call_operand.hbm [shape: f32[16,128], index: 0, kind: input, shape index: {}]   ;;  %s278_s1 = inlined_call_operand.hbm [shape: f32[16,128], index: 1, kind: input, shape index: {}]   ;;  %s279_s2 = inlined_call_operand.hbm [shape: f32[1,1], index: 2, kind: output, shape index: {}]  }
   0x1   :  { %8 = vsyncpa [#allocation7], 0 }
   0x2   :  { %9 = vsyncpa [#allocation5], 0  ;;  %s18_s11 = sshll.u32 %s277_s0, 4  ;;  %s248_s12 = smov [#allocation3]   ;;  %s19_s11 = int_to_ptr.hbm [resolvable:$true] %s18_s11 }
   0x3   :  { %s20_s13 = sshll.u32 %s248_s12, 4  ;;  %s35_s16 = sshll.u32 %s278_s1, 4  ;;  %s21_s13 = int_to_ptr.vmem [resolvable:$true] %s20_s13  ;;  %s36_s16 = int_to_ptr.hbm [resolvable:$true] %s35_s16 }
   0x4   :  { %s249_s17 = smov 128   ;;  %s250_s18 = smov 8  }
   0x5   :  { %26 = dma.hbm_to_vmem [thread:$0]  %s19_s11, 256, %s21_s13, [#allocation4], %s249_s17, %s249_s17, %s250_s18  }
   0x6   :  { %s251_s19 = smov [#allocation6]  }
   0x7   :  { %s37_s20 = sshll.u32 %s251_s19, 4  ;;  %s38_s20 = int_to_ptr.vmem [resolvable:$true] %s37_s20 }
   0x8   :  { %43 = dma.hbm_to_vmem [thread:$0]  %s36_s16, 256, %s38_s20, [#allocation7], %s249_s17, %s249_s17, %s250_s18  }
   0x9   :  { %242 = dma.done.wait [#allocation4], 256  }
   0xa   :  { %243 = vsyncadd [#allocation4], 4294967040 }
   0xb   :  { %244 = dma.done.wait [#allocation7], 256  }
   0xc   :  { %245 = vsyncadd [#allocation7], 4294967040  ;;  %v61_v0 = vld [vmem:[#allocation3] sm:$0xff]  ;;  %v62_v1 = vld [vmem:[#allocation3 + $0x8] sm:$0xff]  ;;  %s149_s21 = sshll.u32 %s279_s2, 4  ;;  %s252_s23 = smov [#allocation8]   ;;  %s150_s21 = int_to_ptr.hbm [resolvable:$true] %s149_s21 }
   0xd   :  { %v63_v2 = vld [vmem:[#allocation6] sm:$0xff]  ;;  %v64_v3 = vld [vmem:[#allocation6 + $0x8] sm:$0xff]  ;;  %v67_v4 = vsub.f32 0.0, %v61_v0  ;;  %v68_v5 = vsub.f32 0.0, %v62_v1 }
   0xe   :  { %vm65_vm0 = vcmp.ge.f32.partialorder %v63_v2, 0.5  ;;  %vm66_vm1 = vcmp.ge.f32.partialorder %v64_v3, 0.5 }
   0xf   :  { %v69_v6 = vsel %vm65_vm0, %v61_v0, %v67_v4  ;;  %v70_v7 = vsel %vm66_vm1, %v62_v1, %v68_v5 }
  0x10   :  { %v161_v8 = vmul.f32 -1.442695, %v69_v6  ;;  %v162_v9 = vmul.f32 -1.442695, %v70_v7 }
  0x12   :  { %170 = vpow2.f32 %v161_v8 }
  0x13   :  { %172 = vpow2.f32 %v162_v9 }
  0x18   :  { %v171_v10 = vpop.eup %170 }
  0x19   :  { %v173_v11 = vpop.eup %172  ;;  %v77_v12 = vadd.f32 1.0, %v171_v10 }
  0x1a   :  { %v78_v13 = vadd.f32 1.0, %v173_v11 }
  0x1b   :  { %174 = vrcp.f32 %v77_v12  ;;  %vm84_vm2 = vweird.f32 %v77_v12  ;;  %v90_v17 = vand.u32 2147483648, %v77_v12  ;;  %v88_v20 = vand.u32 2147483647, %v77_v12 }
  0x1c   :  { %176 = vrcp.f32 %v78_v13  ;;  %v105_v21 = vand.u32 2147483648, %v78_v13  ;;  %vm99_vm4 = vweird.f32 %v78_v13  ;;  %v103_v23 = vand.u32 2147483647, %v78_v13 }
  0x1d   :  { %v91_v25 = vor.u32 1.1754944e-38, %v90_v17  ;;  %vm89_vm7 = vcmp.eq.f32.partialorder %v88_v20, 8.507059e+37 }
  0x1e   :  { %v106_v28 = vor.u32 1.1754944e-38, %v105_v21  ;;  %vm104_vm9 = vcmp.eq.f32.partialorder %v103_v23, 8.507059e+37 }
  0x21   :  { %v175_v14 = vpop.eup %174 }
  0x22   :  { %v177_v15 = vpop.eup %176  ;;  %v80_v16 = vmul.f32 %v175_v14, %v77_v12  ;;  %vm85_vm3 = vweird.f32 %v175_v14 }
  0x23   :  { %v95_v18 = vmul.f32 %v177_v15, %v78_v13  ;;  %vm100_vm5 = vweird.f32 %v177_v15  ;;  %vm86_vm6 = vmor %vm84_vm2, %vm85_vm3 }
  0x24   :  { %v81_v19 = vsub.f32 1.0, %v80_v16  ;;  %vm101_vm8 = vmor %vm99_vm4, %vm100_vm5 }
  0x25   :  { %v96_v22 = vsub.f32 1.0, %v95_v18 }
  0x26   :  { %v82_v24 = vmul.f32 %v175_v14, %v81_v19 }
  0x27   :  { %v97_v26 = vmul.f32 %v177_v15, %v96_v22 }
  0x28   :  { %v83_v27 = vadd.f32 %v175_v14, %v82_v24 }
  0x29   :  { %v98_v29 = vadd.f32 %v177_v15, %v97_v26 }
  0x2a   :  { %v87_v30 = vsel %vm86_vm6, %v175_v14, %v83_v27 }
  0x2b   :  { %v92_v31 = vsel %vm89_vm7, %v91_v25, %v87_v30  ;;  %v102_v32 = vsel %vm101_vm8, %v177_v15, %v98_v29 }
  0x2c   :  { %v107_v33 = vsel %vm104_vm9, %v106_v28, %v102_v32  ;;  %v109_v34 = vmax.f32 %v92_v31, 0.0001  ;;  %v119_v38 = vsub.f32 1.0, %v92_v31 }
  0x2d   :  { %v110_v35 = vmax.f32 %v107_v33, 0.0001  ;;  %v120_v39 = vsub.f32 1.0, %v107_v33 }
  0x2e   :  { %v111_v36 = vmin.f32 %v109_v34, 0.9999  ;;  %v121_v43 = vmul.f32 %v119_v38, %v119_v38 }
  0x2f   :  { %v112_v37 = vmin.f32 %v110_v35, 0.9999  ;;  %v122_v45 = vmul.f32 %v120_v39, %v120_v39 }
  0x30   :  { %178 = vlog2.f32 %v111_v36 }
  0x31   :  { %180 = vlog2.f32 %v112_v37 }
  0x36   :  { %v179_v40 = vpop.eup %178 }
  0x37   :  { %v181_v41 = vpop.eup %180  ;;  %v114_v42 = vmul.f32 0.6931472, %v179_v40 }
  0x38   :  { %v116_v44 = vmul.f32 0.6931472, %v181_v41 }
  0x39   :  { %v117_v46 = vsub.f32 0.0, %v114_v42 }
  0x3a   :  { %v118_v47 = vsub.f32 0.0, %v116_v44 }
  0x3b   :  { %v123_v48 = vmul.f32 %v121_v43, %v117_v46 }
  0x3c   :  { %v124_v49 = vmul.f32 %v122_v45, %v118_v47 }
  0x3e   :  { %v126_v50 = vadd.f32 %v124_v49, %v123_v48 }
  0x40   :  { %133 = vadd.xlane.f32.xlu0 %v126_v50 }
  0xb3   :  { %v134_v51 = vpop.xlane.xlu0 %133 }
  0xb4   :  { %v135_v52 = vrot.slane %v134_v51, 4 }
  0xb6   :  { %v136_v53 = vadd.f32 %v135_v52, %v134_v51 }
  0xb8   :  { %v137_v54 = vrot.slane %v136_v53, 2 }
  0xba   :  { %v138_v55 = vadd.f32 %v137_v54, %v136_v53 }
  0xbc   :  { %v139_v56 = vrot.slane %v138_v55, 1 }
  0xbe   :  { %v140_v57 = vadd.f32 %v139_v56, %v138_v55 }
  0xc0   :  { %163 = vpush %v140_v57 }
  0xf1   :  { %s164_s22 = spop %163 }
  0xf2   :  { %143 = sst [smem:[#allocation8]] %s164_s22 }
  0xf3   :  { %152 = dma.smem_to_hbm %s252_s23, 16, %s150_s21, [#allocation5]  }
  0xf4   :  { %246 = dma.done.wait [#allocation5], 16  }
  0xf5   :  { %247 = vsyncadd [#allocation5], 4294967280 }
  0xf6   :  { %157 = sfence }
  0xf7   :  { %158 = vsyncpa [#allocation4], 1 }
  0xf8   :  { %159 = vsyncpa [#allocation7], 1 }
  0xf9   :  { %160 = vsyncpa [#allocation5], 1 }

</bundles_post_ra>
